<compile_context>
chip_gen: v7x
topology: tpu7x:2x2x1
jax: 0.10.0
libtpu: 0.0.40
codegen_flags: <defaults>
</compile_context>

<pallas_src>
import functools
import math

import jax
import jax.numpy as jnp
from jax import lax
from jax.experimental import pallas as pl
from jax.experimental.pallas import tpu as pltpu

LRELU_SLOPE = 0.1          # modules.LRELU_SLOPE in the reference code
KERNEL_SIZE = 5
STRIDE = 3
CHANNELS = [1, 32, 128, 384, 1024, 1024]   # conv channel progression (conv_post: 1024 -> 1)


def get_padding(kernel_size, dilation=1):
    return int((kernel_size * dilation - dilation) / 2)


def _round_up(x, m):
    return ((x + m - 1) // m) * m


def _vmem_limit_bytes():
    # Valid on every generation: <= ~3/4 of per-core VMEM capacity, capped at 96 MiB.
    try:
        cap = int(pltpu.get_tpu_info().vmem_capacity_bytes)
        return min((cap * 3) // 4, 96 << 20)
    except Exception:
        return 48 << 20          # safe on v7x (64 MiB) and v5e/v6e (128 MiB)


_VMEM_LIMIT = _vmem_limit_bytes()


# ---------------------------------------------------------------------------
# Pallas kernel: fused (patches @ weight) + bias [+ leaky_relu]
#   x: (tm, K) bf16, w: (K, Np) bf16 (grid-invariant), b: (1, Np) f32 -> o: (tm, Np)
# ---------------------------------------------------------------------------
def _gemm_bias_act_kernel(x_ref, w_ref, b_ref, o_ref, *, slope):
    acc = jnp.dot(x_ref[...], w_ref[...], preferred_element_type=jnp.float32)
    acc = acc + b_ref[...]                      # (1, Np) broadcasts over (tm, Np)
    if slope is not None:
        acc = jnp.where(acc >= 0, acc, acc * slope)
    o_ref[...] = acc.astype(o_ref.dtype)


def _pick_tm(M, K, Np, out_itemsize):
    """Largest M tile that keeps (resident bf16 weight + double-buffered x/out tiles)
    inside the per-chip VMEM limit."""
    w_bytes = 4 * K * Np                          # bf16 weight, assume 2 buffers
    per_row = 2 * (2 * K + out_itemsize * Np)     # double-buffered bf16 x row + out row
    budget = _VMEM_LIMIT - w_bytes - (8 << 20)    # slack for bias/internal scratch
    tm = max(256, min(1024, (budget // per_row) // 256 * 256))
    if K >= 4096:
        tm = min(tm, 512)                         # K=5120 layers: safe on v7x's 64 MiB VMEM
    if M <= tm:
        if M >= 512:
            # split into ~2 tiles so v7x's second TensorCore gets work on small-M layers
            tm = _round_up(-(-M // 2), 16)
        else:
            tm = M                                # single full-extent block (always legal)
    return int(tm)


def gemm_bias_act(x, w, b2, slope, out_dtype):
    """x: (M, K) bf16, w: (K, Np) bf16 with Np % 128 == 0, b2: (1, Np) f32.

    Returns (M, Np) out_dtype.  Tiled over M only; the weight/bias BlockSpecs are
    grid-invariant so they are DMA'd into VMEM once and reused by every M tile.
    Partial M blocks (M % tm != 0) are handled by Pallas boundary masking.
    """
    M, K = x.shape
    Np = w.shape[1]
    assert Np % 128 == 0, Np

    tm = _pick_tm(M, K, Np, jnp.dtype(out_dtype).itemsize)
    kernel = functools.partial(_gemm_bias_act_kernel, slope=slope)
    return pl.pallas_call(
        kernel,
        out_shape=jax.ShapeDtypeStruct((M, Np), out_dtype),
        grid=(pl.cdiv(M, tm),),
        in_specs=[
            pl.BlockSpec((tm, K), lambda i: (i, 0)),
            pl.BlockSpec((K, Np), lambda i: (0, 0)),   # grid-invariant: fetched once
            pl.BlockSpec((1, Np), lambda i: (0, 0)),   # grid-invariant bias
        ],
        out_specs=pl.BlockSpec((tm, Np), lambda i: (i, 0)),
        compiler_params=pltpu.CompilerParams(
            dimension_semantics=("parallel",),
            vmem_limit_bytes=_VMEM_LIMIT,
        ),
    )(x, w, b2)


# ---------------------------------------------------------------------------
# Param preparation (done ONCE, outside the forward pass)
# ---------------------------------------------------------------------------
def prepare_params(params):
    """(Cout, Cin, K) torch-style weights -> ((K*Cin, Np) bf16, (1, Np) f32, Cout)
    with Np = round_up(Cout, 128) so Pallas output stores are always lane-dense."""
    prepped = []
    for w, b in params:
        cout, cin, k = w.shape
        # patch column index = tap*Cin + cin -> weight row order must match.
        wm = jnp.transpose(w, (2, 1, 0)).reshape(k * cin, cout)
        n_pad = _round_up(cout, 128) - cout
        if n_pad:
            wm = jnp.pad(wm, ((0, 0), (0, n_pad)))
            b = jnp.pad(b, ((0, n_pad),))
        prepped.append((wm.astype(jnp.bfloat16),
                        b.reshape(1, -1).astype(jnp.float32),
                        cout))
    return prepped


# ---------------------------------------------------------------------------
# One Conv2d((k,1),(s,1),(p,0)) layer = im2col (glue, bf16) + Pallas GEMM (hot path)
# ---------------------------------------------------------------------------
def conv_k1_layer(x, wm, b2, n_out, kernel_size, stride, pad, slope, out_dtype):
    """x: (B, H, W, C) NHWC bf16.  wm: (K*C, Np) bf16, b2: (1, Np) f32."""
    B, H, W, C = x.shape
    xp = jnp.pad(x, ((0, 0), (pad, pad), (0, 0), (0, 0)))          # zero pad along H
    Hp = H + 2 * pad
    H_out = (Hp - kernel_size) // stride + 1
    # im2col: strided H-slice per kernel tap; concat over taps -> column = tap*C + cin.
    # TODO(synk): fuse the im2col into the kernel (tap-shifted (tm,C)@(C,Np) accumulation
    # via pl.ds row offsets) so the K*C-wide patch tensor never hits HBM on the big-M
    # early layers; also special-case layer 1 (Cin=1, K=5) as shifted VPU FMAs.
    cols = [xp[:, i: i + stride * H_out: stride] for i in range(kernel_size)]
    patches = jnp.concatenate(cols, axis=-1)                       # (B, H_out, W, K*C) bf16
    pm = patches.reshape(B * H_out * W, kernel_size * C)
    y = gemm_bias_act(pm, wm, b2, slope, out_dtype)                # (M, Np)
    if n_out != y.shape[1]:
        y = y[:, :n_out]
    return y.reshape(B, H_out, W, n_out)


# ---------------------------------------------------------------------------
# Full DiscriminatorP forward
# ---------------------------------------------------------------------------
def discriminator_p_forward(x, prepped, period):
    """x: (b, c=1, t) like the PyTorch module. Returns (flat_out, fmap); fmap is NHWC.

    Note: intermediate fmap entries are bf16 (GEMMs accumulate in f32); the final
    conv_post output (and flattened logits) is f32.
    """
    b, c, t = x.shape
    if t % period != 0:
        n_pad = period - t % period
        mode = "reflect" if n_pad < t else "edge"   # torch F.pad(reflect) would error if n_pad >= t
        x = jnp.pad(x, ((0, 0), (0, 0), (0, n_pad)), mode=mode)
        t = t + n_pad
    x = x.reshape(b, c, t // period, period)        # NCHW
    x = jnp.transpose(x, (0, 2, 3, 1))              # -> NHWC
    x = x.astype(jnp.bfloat16)                      # single cast; stays bf16 end-to-end

    fmap = []
    for i in range(5):
        wm, b2, n_out = prepped[i]
        stride = STRIDE if i < 4 else 1
        x = conv_k1_layer(x, wm, b2, n_out, KERNEL_SIZE, stride,
                          get_padding(KERNEL_SIZE, 1), LRELU_SLOPE, jnp.bfloat16)
        fmap.append(x)
    wm, b2, n_out = prepped[5]                      # conv_post: k=3, stride=1, pad=1
    x = conv_k1_layer(x, wm, b2, n_out, 3, 1, 1, None, jnp.float32)
    fmap.append(x)
    # torch.flatten(x, 1, -1) on NCHW with C=1 == flattening NHWC with C=1.
    return x.reshape(b, -1), fmap


# ---------------------------------------------------------------------------
# Pure-JAX (XLA conv, f32) reference for verification
# ---------------------------------------------------------------------------
def reference_forward(x, params, period):
    b, c, t = x.shape
    if t % period != 0:
        n_pad = period - t % period
        x = jnp.pad(x, ((0, 0), (0, 0), (0, n_pad)), mode="reflect")
        t = t + n_pad
    x = x.reshape(b, c, t // period, period)
    for i in range(5):
        w, bias = params[i]
        stride = STRIDE if i < 4 else 1
        pad = get_padding(KERNEL_SIZE, 1)
        x = lax.conv_general_dilated(x, w[..., None], (stride, 1),
                                     [(pad, pad), (0, 0)],
                                     dimension_numbers=("NCHW", "OIHW", "NCHW"))
        x = x + bias[None, :, None, None]
        x = jnp.where(x >= 0, x, LRELU_SLOPE * x)
    w, bias = params[5]
    x = lax.conv_general_dilated(x, w[..., None], (1, 1), [(1, 1), (0, 0)],
                                 dimension_numbers=("NCHW", "OIHW", "NCHW"))
    x = x + bias[None, :, None, None]
    return x.reshape(b, -1)


def init_params(key):
    """Deterministic synthetic params. weight_norm at init reproduces the raw init weight,
    so we just use plain Conv2d-style (kaiming-uniform-ish) weights."""
    params = []
    layer_defs = [(CHANNELS[i], CHANNELS[i + 1], KERNEL_SIZE) for i in range(5)]
    layer_defs.append((1024, 1, 3))                 # conv_post
    for cin, cout, k in layer_defs:
        key, k1, k2 = jax.random.split(key, 3)
        scale = 1.0 / math.sqrt(cin * k)
        w = jax.random.uniform(k1, (cout, cin, k), jnp.float32, -scale, scale)
        b = jax.random.uniform(k2, (cout,), jnp.float32, -scale, scale)
        params.append((w, b))
    return params


if __name__ == "__main__":
    period = 4
    key = jax.random.PRNGKey(0)
    key, pkey, xkey = jax.random.split(key, 3)
    params = init_params(pkey)
    prepped = prepare_params(params)                # weight transpose/pad/bf16 done once

    # small input: batch=2, channels=1, t=22 (not divisible by period -> reflect pad path)
    x = jax.random.normal(xkey, (2, 1, 22), dtype=jnp.float32)

    flat, fmap = discriminator_p_forward(x, prepped, period)
    flat = jax.block_until_ready(flat)
    fmap = jax.block_until_ready(fmap)

    ref = jax.block_until_ready(reference_forward(x, params, period))
    assert flat.shape == ref.shape, (flat.shape, ref.shape)
    max_err = float(jnp.max(jnp.abs(flat - ref)))
    # bf16 GEMMs / bf16 intermediate activations (f32 accumulation) vs f32 XLA reference
    assert jnp.allclose(flat, ref, rtol=5e-2, atol=1e-2), max_err
    assert len(fmap) == 6
    assert fmap[0].shape[-1] == 32 and fmap[-1].shape[-1] == 1

    print("KERNEL_OK")
</pallas_src>

<mosaic_0001>
module attributes {stable_mosaic.version = 11 : i64} {
  func.func @_gemm_bias_act_kernel(%arg0: i32, %arg1: memref<16x5xbf16, #tpu.memory_space<vmem>>, %arg2: memref<5x128xbf16, #tpu.memory_space<vmem>>, %arg3: memref<1x128xf32, #tpu.memory_space<vmem>>, %arg4: memref<16x128xbf16, #tpu.memory_space<vmem>>) attributes {dimension_semantics = [#tpu.dimension_semantics<parallel>], iteration_bounds = array<i64: 1>, scalar_prefetch = 0 : i64, scratch_operands = 0 : i64, tpu.core_type = #tpu.core_type<tc>, window_params = [{transform_indices = @transform_0, window_bounds = array<i64: 16, 5>}, {pipeline_mode = #tpu.pipeline_mode<synchronous>, transform_indices = @transform_1, window_bounds = array<i64: 5, 128>}, {pipeline_mode = #tpu.pipeline_mode<synchronous>, transform_indices = @transform_2, window_bounds = array<i64: 1, 128>}, {transform_indices = @transform_3, window_bounds = array<i64: 16, 128>}]} {
    %c0 = arith.constant 0 : index
    %c0_0 = arith.constant 0 : index
    %0 = vector.load %arg1[%c0, %c0_0] : memref<16x5xbf16, #tpu.memory_space<vmem>>, vector<16x5xbf16>
    %c0_1 = arith.constant 0 : index
    %c0_2 = arith.constant 0 : index
    %1 = vector.load %arg2[%c0_1, %c0_2] : memref<5x128xbf16, #tpu.memory_space<vmem>>, vector<5x128xbf16>
    %cst = arith.constant dense<0.000000e+00> : vector<16x128xf32>
    %2 = tpu.matmul %0, %1, %cst {dimension_numbers = #tpu.dot_dimension_numbers<[1], [0], [0], [1], [0, 0, 1, 1], [], []>} : vector<16x5xbf16>, vector<5x128xbf16>, vector<16x128xf32> -> vector<16x128xf32>
    %c0_3 = arith.constant 0 : index
    %c0_4 = arith.constant 0 : index
    %3 = vector.load %arg3[%c0_3, %c0_4] : memref<1x128xf32, #tpu.memory_space<vmem>>, vector<1x128xf32>
    %4 = vector.broadcast %3 : vector<1x128xf32> to vector<16x128xf32>
    %5 = arith.addf %2, %4 : vector<16x128xf32>
    %cst_5 = arith.constant 0.000000e+00 : f32
    %6 = vector.broadcast %cst_5 : f32 to vector<16x128xf32>
    %7 = arith.cmpf oge, %5, %6 : vector<16x128xf32>
    %cst_6 = arith.constant 1.000000e-01 : f32
    %8 = vector.broadcast %cst_6 : f32 to vector<16x128xf32>
    %9 = arith.mulf %5, %8 : vector<16x128xf32>
    %10 = arith.select %7, %5, %9 : vector<16x128xi1>, vector<16x128xf32>
    %11 = arith.truncf %10 : vector<16x128xf32> to vector<16x128xbf16>
    %c0_7 = arith.constant 0 : index
    %c0_8 = arith.constant 0 : index
    %12 = vector.load %arg4[%c0_7, %c0_8] : memref<16x128xbf16, #tpu.memory_space<vmem>>, vector<16x128xbf16>
    tpu.vector_store %arg4[%c0_7, %c0_8], %11 {strides = array<i32>} : memref<16x128xbf16, #tpu.memory_space<vmem>>, vector<16x128xbf16>,
    return
  }
  func.func @transform_0(%arg0: i32) -> (i32, i32) {
    %c0_i32 = arith.constant 0 : i32
    %c0_i32_0 = arith.constant 0 : i32
    return %arg0, %c0_i32 : i32, i32
  }
  func.func @transform_1(%arg0: i32) -> (i32, i32) {
    %c0_i32 = arith.constant 0 : i32
    %c0_i32_0 = arith.constant 0 : i32
    %c0_i32_1 = arith.constant 0 : i32
    return %c0_i32, %c0_i32_0 : i32, i32
  }
  func.func @transform_2(%arg0: i32) -> (i32, i32) {
    %c0_i32 = arith.constant 0 : i32
    %c0_i32_0 = arith.constant 0 : i32
    %c0_i32_1 = arith.constant 0 : i32
    return %c0_i32, %c0_i32_0 : i32, i32
  }
  func.func @transform_3(%arg0: i32) -> (i32, i32) {
    %c0_i32 = arith.constant 0 : i32
    %c0_i32_0 = arith.constant 0 : i32
    return %arg0, %c0_i32 : i32, i32
  }
}

</mosaic_0001>

<bundles_post_ra>
// kernel: tpu_custom_call.1
= control target key start
LH: loop header
LB: loop body
LE: loop exit
PB: predicated region body
PF: predicated region fallthrough
CT: control target
= control target key end

     0   :  { %vm35_vm0 = vcmask 1041408   ;;  %vm36_vm1 = vcmask 1042432   ;;  %v166_v1 = vmov 0.0   ;;  %v167_v2 = vmov 65535   ;;  %s213_s0 = inlined_call_operand.vmem [shape: bf16[16,5], index: 0, kind: input, shape index: {}]   ;;  %s214_s1 = inlined_call_operand.vmem [shape: bf16[5,128], index: 1, kind: input, shape index: {}]   ;;  %s215_s2 = inlined_call_operand.vmem [shape: f32[1,128], index: 2, kind: input, shape index: {}]   ;;  %s216_s3 = inlined_call_operand.hbm [shape: bf16[16,128], index: 3, kind: output, shape index: {}]  }
   0x1   :  { %v18_v0 = vld [vmem:[%s214_s1] sm:$0x7]  ;;  %129 = vmatprep.subr.bf16.mxu0 %v166_v1  ;;  %v37_v3 = vsel %vm35_vm0, 4294967295, %v167_v2  ;;  %vm168_vm2 = vmmov 0  }
   0x2   :  { %v38_v4 = vsel %vm36_vm1, %v37_v3, 0  ;;  %131 = vmatprep.mubr.msk.bf16.mxu0 %vm168_vm2, %v166_v1 }
   0x3   :  { %v40_v5 = vand.u32 %v38_v4, %v18_v0 }
   0x4   :  { %8 = vsyncpa [#allocation3], 0  ;;  %v141_v6 = vld [vmem:[%s213_s0] sm:$0xff]   ;;  %vm31_vm3 = vcmask 39936   ;;  %s169_s17 = smov [#allocation2]  }
   0x5   :  { %130 = vmatpush3.bf16.msra.mxu0 %v40_v5  ;;  %v115_v7 = vld [vmem:[%s215_s2] ss:$0 sm:$0xff]  ;;  %s104_s18 = sshll.u32 %s169_s17, 4  ;;  %s105_s18 = int_to_ptr.vmem [resolvable:$true] %s104_s18 }
   0x6   :  { %s142_s0 = scalar_lea.vmem %s105_s18, 128  ;;  %p147_p1 = scmp.lt.s32.totalorder %s105_s18, %s105_s18 }
   0x7   :  { %p143_p0 = scmp.ne.s32.totalorder %s105_s18, %s142_s0  ;;  %p148_p2 = scmp.lt.s32.totalorder %s142_s0, %s142_s0 }
   0x8   :  { %132 = vmatmul.mubr.msk.bf16.vlgmr.msra.gmra.mrb[0].mxu0 %vm31_vm3, %v141_v6 }
   0x9   :  { %p149_p3 = por %p148_p2, %p147_p1 }
   0xb   :  { %p150_p4 = pnand %p149_p3, %p143_p0 }
  0xdb   :  { %v76_v8 = vpop.f32.mrb[0].mxu0 }
  0xdc   :  { %v77_v9 = vadd.f32 %v115_v7, %v76_v8  ;;  %v133_v10 = vpop.f32.mrb[1].mxu0 }
  0xdd   :  { %v79_v11 = vpop.f32.mrb[2].mxu0 }
  0xde   :  { %v85_v12 = vmul.f32 0.1, %v77_v9  ;;  %v80_v13 = vadd.f32 %v115_v7, %v79_v11  ;;  %v134_v14 = vpop.f32.mrb[3].mxu0  ;;  %vm83_vm4 = vcmp.ge.f32.partialorder %v77_v9, 0.0 }
  0xe0   :  { %vm84_vm5 = vcmp.ge.f32.partialorder %v80_v13, 0.0  ;;  %v86_v15 = vmul.f32 0.1, %v80_v13  ;;  %v87_v16 = vsel %vm83_vm4, %v77_v9, %v85_v12 }
  0xe2   :  { %v88_v17 = vsel %vm84_vm5, %v80_v13, %v86_v15 }
  0xe3   :  { %v125_v18 = vpack.c.bf16 %v88_v17, %v87_v16 }
  0xe5   :  { %126 = vst [vmem:[#allocation2] sm:$0xff] %v125_v18  }
  0xe6   :  { %153 = shalt.err (!%p150_p4)
}
  0xe7   :  { %s154_s20 = scalar_lea.hbm %s216_s3, 128 }
  0xe8   :  { %p155_p5 = scmp.ne.s32.totalorder %s216_s3, %s154_s20  ;;  %p158_p6 = scmp.lt.u32.totalorder %s154_s20, %s216_s3 }
  0xea   :  { %p160_p7 = pnand %p158_p6, %p155_p5 }
  0xec   :  { %163 = shalt.err (!%p160_p7)
}
  0xed   :  { %s170_s25 = smov 64   ;;  %s171_s26 = smov 4  }
  0xee   :  { %110 = dma.vmem_to_hbm [thread:$0]  %s105_s18, 128, %s216_s3, [#allocation3], %s170_s25, %s170_s25, %s171_s26  }
  0xef   :  { %164 = dma.done.wait [#allocation3], 128  }
  0xf0   :  { %165 = vsyncadd [#allocation3], 4294967168 }
  0xf1   :  { %114 = vsyncpa [#allocation3], 1 }

</bundles_post_ra>
